<compile_context>
chip_gen: v6e
topology: v6e:2x2x1
jax: 0.10.0
libtpu: 0.0.40
codegen_flags: <defaults>
</compile_context>

<pallas_src>
import functools

import jax
import jax.numpy as jnp
from jax import lax
from jax.experimental import pallas as pl
from jax.experimental.pallas import tpu as pltpu


def _round_up(x, m):
    return (x + m - 1) // m * m


def _vmem_limit_bytes():
    # Generation-aware VMEM request: ~80% of physical capacity (v7x: 64 MiB,
    # v5e/v6e: 128 MiB), never asking for the whole thing.
    cap = 128 * 1024 * 1024
    get_info = getattr(pltpu, "get_tpu_info", None)
    if get_info is not None:
        try:
            info = get_info()
            cap = int(getattr(info, "vmem_capacity_bytes", cap) or cap)
        except Exception:
            pass
    return min(max(32 * 1024 * 1024, int(cap * 0.8)), 128 * 1024 * 1024)


def _phase1_kernel(x_ref, xs_ref, wqm_ref, wv_ref, wk_ref, alpha_ref,
                   layout_ref, s1_ref, s2_ref, cnt_ref,
                   *, n_class, inv_kama, valid_hw, tile_hw, total_hw):
    j = pl.program_id(1)
    xa = x_ref[0]                                                     # (C1, T) bf16

    # Channel-mixing matmuls: bf16 operands, f32 accumulation on the MXU.
    qm = jnp.dot(wqm_ref[...], xa, preferred_element_type=jnp.float32)   # (nClass+c8p, T)
    xv = jnp.dot(wv_ref[...], xa, preferred_element_type=jnp.float32)    # (C, T)
    x_mask = qm[:n_class]                                             # (nClass, T)
    xq = qm[n_class:]                                                 # (c8p, T)

    # Fast filters at the pre-gathered sampled positions (tiny matmuls).
    ffT = lax.dot_general(xs_ref[0], wk_ref[...], (((0,), (1,)), ((), ())),
                          preferred_element_type=jnp.float32)         # (nClass, c8p)
    fast = jnp.dot(ffT.astype(jnp.bfloat16), xq.astype(jnp.bfloat16),
                   preferred_element_type=jnp.float32)                # (nClass, T)

    alpha = jnp.clip(alpha_ref[...], 0.0, 1.0)                        # (nClass, 1) f32
    layout = jax.nn.softmax((alpha * fast + x_mask) * inv_kama, axis=0)

    if valid_hw != total_hw:   # static: mask spatial padding out of stats/output
        col = j * tile_hw + lax.broadcasted_iota(jnp.int32, layout.shape, 1)
        layout = jnp.where(col < valid_hw, layout, 0.0)

    layout_ref[0] = layout.astype(layout_ref.dtype)

    # Per-(class, channel) moments as MXU matmuls (bf16 in, f32 accumulate).
    s1 = lax.dot_general(layout.astype(jnp.bfloat16), xv.astype(jnp.bfloat16),
                         (((1,), (1,)), ((), ())),
                         preferred_element_type=jnp.float32)          # (nClass, C)
    s2 = lax.dot_general((layout * layout).astype(jnp.bfloat16),
                         (xv * xv).astype(jnp.bfloat16),
                         (((1,), (1,)), ((), ())),
                         preferred_element_type=jnp.float32)          # (nClass, C)
    cnt = jnp.sum(layout, axis=1, keepdims=True)                      # (nClass, 1)

    @pl.when(j == 0)
    def _():
        s1_ref[...] = jnp.zeros_like(s1_ref)
        s2_ref[...] = jnp.zeros_like(s2_ref)
        cnt_ref[...] = jnp.zeros_like(cnt_ref)

    s1_ref[0] += s1
    s2_ref[0] += s2
    cnt_ref[0] += cnt


def _phase2_kernel(x_ref, lay_ref, ab_ref, wv_ref, sigma_ref, out_ref, *, n_chan):
    xa = x_ref[0]                                                     # (C1, T) bf16
    xv = jnp.dot(wv_ref[...], xa, preferred_element_type=jnp.float32)    # (C, T)
    lay_bf = lay_ref[0].astype(jnp.bfloat16)                          # (nClass, T)
    # Fused reconstruction: rec = [inv_std ; mean*inv_std]^T @ layout  -> (2C, T)
    rec = lax.dot_general(ab_ref[0], lay_bf, (((0,), (0,)), ((), ())),
                          preferred_element_type=jnp.float32)
    a = rec[:n_chan]
    bterm = rec[n_chan:]
    xn = xv * a - bterm
    x_res = xa.astype(jnp.float32)[:n_chan]                           # residual input
    out_ref[0] = (x_res + sigma_ref[0] * xn).astype(out_ref.dtype)


def attnorm_forward(x, params, sampling_pos, *, nClass=16, kama=10.0,
                    orth_lambda=1e-3, eps=1e-7, layout_dtype=None):
    b, c, h, w = x.shape
    assert c % 8 == 0, "channel count must be a multiple of 8 (sublane tile)"
    assert nClass % 8 == 0, "nClass must be a multiple of 8 (aligned slices)"
    hw = h * w
    hw_pad = _round_up(hw, 128)
    # Spatial tile: largest multiple of 128 (<= 2048 lanes) dividing hw_pad.
    m = hw_pad // 128
    tile_hw = 128 * max(k for k in range(1, min(m, 16) + 1) if m % k == 0)
    n_t = hw_pad // tile_hw
    c8 = c // 8
    c8p = _round_up(c8, 8)
    c1 = _round_up(c + 1, 8)              # channels + ones row (bias fold), aligned
    layout_dtype = x.dtype if layout_dtype is None else layout_dtype
    vmem_limit = _vmem_limit_bytes()

    # x laid out (B, C+1(+pad), HW_pad): ones row folds all conv biases into the
    # matmuls; cast ONCE to bf16 for MXU operands.
    xf = x.reshape(b, c, hw).astype(jnp.float32)
    x_aug = jnp.concatenate(
        [xf, jnp.ones((b, 1, hw), jnp.float32),
         jnp.zeros((b, c1 - c - 1, hw), jnp.float32)], axis=1)
    x_aug = jnp.pad(x_aug, ((0, 0), (0, 0), (0, hw_pad - hw))).astype(jnp.bfloat16)
    xs = jnp.take(x_aug, sampling_pos, axis=2)                 # (b, C1, nClass) bf16

    wm = params["xmask_filter"].reshape(nClass, c).astype(jnp.float32)
    w_qm = jnp.zeros((nClass + c8p, c1), jnp.float32)
    w_qm = w_qm.at[:nClass, :c].set(wm)                        # mask filter (no bias)
    w_qm = w_qm.at[nClass:nClass + c8, :c].set(params["wq"])
    w_qm = w_qm.at[nClass:nClass + c8, c].set(params["bq"])
    w_qm = w_qm.astype(jnp.bfloat16)
    w_k = (jnp.zeros((c8p, c1), jnp.float32)
           .at[:c8, :c].set(params["wk"]).at[:c8, c].set(params["bk"])
           ).astype(jnp.bfloat16)
    w_v = (jnp.zeros((c, c1), jnp.float32)
           .at[:, :c].set(params["wv"]).at[:, c].set(params["bv"])
           ).astype(jnp.bfloat16)
    alpha = params["alpha"].reshape(nClass, 1).astype(jnp.float32)
    sigma = params["sigma"].reshape(1).astype(jnp.float32)

    # ---------------- Phase 1: layout + per-class spatial moments ----------------
    p1 = functools.partial(_phase1_kernel, n_class=nClass, inv_kama=1.0 / kama,
                           valid_hw=hw, tile_hw=tile_hw, total_hw=hw_pad)
    layout_p, s1, s2, cnt = pl.pallas_call(
        p1,
        out_shape=(jax.ShapeDtypeStruct((b, nClass, hw_pad), layout_dtype),
                   jax.ShapeDtypeStruct((b, nClass, c), jnp.float32),
                   jax.ShapeDtypeStruct((b, nClass, c), jnp.float32),
                   jax.ShapeDtypeStruct((b, nClass, 1), jnp.float32)),
        grid_spec=pltpu.PrefetchScalarGridSpec(
            num_scalar_prefetch=0,
            grid=(b, n_t),
            in_specs=[
                pl.BlockSpec((1, c1, tile_hw), lambda i, j: (i, 0, j)),   # x (aug)
                pl.BlockSpec((1, c1, nClass), lambda i, j: (i, 0, 0)),    # sampled cols
                pl.BlockSpec((nClass + c8p, c1), lambda i, j: (0, 0)),    # [wm; wq|bq]
                pl.BlockSpec((c, c1), lambda i, j: (0, 0)),               # [wv|bv]
                pl.BlockSpec((c8p, c1), lambda i, j: (0, 0)),             # [wk|bk]
                pl.BlockSpec((nClass, 1), lambda i, j: (0, 0)),           # alpha
            ],
            out_specs=[
                pl.BlockSpec((1, nClass, tile_hw), lambda i, j: (i, 0, j)),
                pl.BlockSpec((1, nClass, c), lambda i, j: (i, 0, 0)),
                pl.BlockSpec((1, nClass, c), lambda i, j: (i, 0, 0)),
                pl.BlockSpec((1, nClass, 1), lambda i, j: (i, 0, 0)),
            ]),
        compiler_params=pltpu.CompilerParams(
            dimension_semantics=("parallel", "arbitrary"),
            vmem_limit_bytes=vmem_limit),
    )(x_aug, xs, w_qm, w_v, w_k, alpha)

    # Tiny per-(batch, class, channel) statistics: exact f32 divide / sqrt glue.
    n = float(hw)
    cnt_e = cnt + eps                                           # (b, nClass, 1)
    mean = s1 / n / cnt_e                                       # (b, nClass, C)
    var = jnp.maximum((s2 - 2.0 * mean * s1 + n * mean * mean) / cnt_e, 0.0)
    inv_std = 1.0 / (jnp.sqrt(var) + eps)
    ab = jnp.concatenate([inv_std, mean * inv_std], axis=-1).astype(jnp.bfloat16)

    # ---------------- Phase 2: normalized reconstruction + residual ----------------
    p2 = functools.partial(_phase2_kernel, n_chan=c)
    out_p = pl.pallas_call(
        p2,
        out_shape=jax.ShapeDtypeStruct((b, c, hw_pad), x.dtype),
        grid_spec=pltpu.PrefetchScalarGridSpec(
            num_scalar_prefetch=0,
            grid=(b, n_t),
            in_specs=[
                pl.BlockSpec((1, c1, tile_hw), lambda i, j: (i, 0, j)),   # x (aug)
                pl.BlockSpec((1, nClass, tile_hw), lambda i, j: (i, 0, j)),  # layout
                pl.BlockSpec((1, nClass, 2 * c), lambda i, j: (i, 0, 0)),    # [inv_std|mstd]
                pl.BlockSpec((c, c1), lambda i, j: (0, 0)),                  # [wv|bv]
                pl.BlockSpec(memory_space=pltpu.MemorySpace.SMEM),           # sigma scalar
            ],
            out_specs=pl.BlockSpec((1, c, tile_hw), lambda i, j: (i, 0, j))),
        compiler_params=pltpu.CompilerParams(
            dimension_semantics=("parallel", "parallel"),
            vmem_limit_bytes=vmem_limit),
    )(x_aug, layout_p, ab, w_v, sigma)

    out = out_p[:, :, :hw].reshape(b, c, h, w)
    layout = layout_p[:, :, :hw].reshape(b, nClass, h, w)

    # Orthogonality regularizer on the tiny mask weights: plain-JAX glue.
    sym = wm @ wm.T - jnp.eye(nClass, dtype=jnp.float32)
    orth_loss = orth_lambda * jnp.linalg.norm(sym)
    # TODO(synk): for very small images + large batch, block several images per
    # grid step (fold batch into the lane axis) to amortize per-step overhead.
    return out, layout, orth_loss


def attnorm_reference(x, params, sampling_pos, *, nClass=16, kama=10.0, eps=1e-7):
    """Pure-JAX f32 mirror of the PyTorch forward (direct formulation)."""
    b, c, h, w = x.shape
    hw = h * w
    hp = lax.Precision.HIGHEST
    xf = x.reshape(b, c, hw)
    wm = params["xmask_filter"].reshape(nClass, c)
    x_mask = jnp.einsum("nc,bcs->bns", wm, xf, precision=hp)
    xk = jnp.einsum("kc,bcs->bks", params["wk"], xf, precision=hp) + params["bk"][None, :, None]
    xq = jnp.einsum("kc,bcs->bks", params["wq"], xf, precision=hp) + params["bq"][None, :, None]
    ff = xk[:, :, sampling_pos]                                          # (b, C//8, nClass)
    fa = jnp.einsum("bkn,bks->bns", ff, xq, precision=hp)                # (b, nClass, HW)
    alpha = jnp.clip(params["alpha"].reshape(1, nClass, 1), 0.0, 1.0)
    layout = jax.nn.softmax((alpha * fa + x_mask) / kama, axis=1)
    cnt = layout.sum(axis=2, keepdims=True)[:, None] + eps               # (b, 1, nClass, 1)
    xv = jnp.einsum("dc,bcs->bds", params["wv"], xf, precision=hp) + params["bv"][None, :, None]
    hot = xv[:, :, None, :] * layout[:, None, :, :]
    mean = hot.sum(-1, keepdims=True) / hw / cnt
    std = jnp.sqrt(((hot - mean) ** 2).sum(-1, keepdims=True) / cnt)
    xn = ((xv[:, :, None, :] - mean) / (std + eps) * layout[:, None, :, :]).sum(axis=2)
    out = xf + params["sigma"][0] * xn
    return out.reshape(b, c, h, w), layout.reshape(b, nClass, h, w)


if __name__ == "__main__":
    b, c, h, w = 2, 32, 16, 16
    nClass = 16
    key = jax.random.PRNGKey(0)
    keys = jax.random.split(key, 10)

    x = jax.random.normal(keys[0], (b, c, h, w), jnp.float32)
    params = {
        "xmask_filter": jax.random.normal(keys[1], (nClass, c, 1, 1), jnp.float32),
        "wk": 0.1 * jax.random.normal(keys[2], (c // 8, c), jnp.float32),
        "bk": 0.1 * jax.random.normal(keys[3], (c // 8,), jnp.float32),
        "wq": 0.1 * jax.random.normal(keys[4], (c // 8, c), jnp.float32),
        "bq": 0.1 * jax.random.normal(keys[5], (c // 8,), jnp.float32),
        "wv": 0.1 * jax.random.normal(keys[6], (c, c), jnp.float32),
        "bv": 0.1 * jax.random.normal(keys[7], (c,), jnp.float32),
        "alpha": jnp.ones((1, nClass, 1, 1), jnp.float32),
        # module __init__ uses zeros for sigma; nonzero here so the
        # normalization path actually changes the output under test.
        "sigma": jnp.full((1,), 0.5, jnp.float32),
    }
    # TODO(synk): the PyTorch module resamples positions with torch.multinomial
    # every forward; here positions are fixed host-side per call.
    sampling_pos = jax.random.choice(keys[8], h * w, (nClass,), replace=False)

    fwd = jax.jit(functools.partial(attnorm_forward, nClass=nClass))
    out, layout, orth_loss = fwd(x, params, sampling_pos)
    jax.block_until_ready((out, layout, orth_loss))

    ref_out, ref_layout = attnorm_reference(x, params, sampling_pos, nClass=nClass)
    assert out.shape == (b, c, h, w) and layout.shape == (b, nClass, h, w)
    assert bool(jnp.isfinite(orth_loss))
    # bf16 MXU operands (f32 accumulation) give ~1e-3 relative error that the
    # 1/std amplification turns into a few 1e-2 absolute on the residual output;
    # the layout itself stays ~1e-3-accurate.
    assert jnp.allclose(layout, ref_layout, atol=1e-2, rtol=1e-2)
    assert jnp.allclose(out, ref_out, atol=6e-2, rtol=6e-2)
    rel = jnp.linalg.norm(out - ref_out) / (jnp.linalg.norm(ref_out) + 1e-12)
    assert float(rel) < 2e-2
    print("KERNEL_OK")
</pallas_src>

<mosaic_0001>
module attributes {stable_mosaic.version = 11 : i64} {
  func.func @_phase1_kernel(%arg0: i32, %arg1: i32, %arg2: memref<1x40x256xbf16, #tpu.memory_space<vmem>>, %arg3: memref<1x40x16xbf16, #tpu.memory_space<vmem>>, %arg4: memref<24x40xbf16, #tpu.memory_space<vmem>>, %arg5: memref<32x40xbf16, #tpu.memory_space<vmem>>, %arg6: memref<8x40xbf16, #tpu.memory_space<vmem>>, %arg7: memref<16x1xf32, #tpu.memory_space<vmem>>, %arg8: memref<1x16x256xf32, #tpu.memory_space<vmem>>, %arg9: memref<1x16x32xf32, #tpu.memory_space<vmem>>, %arg10: memref<1x16x32xf32, #tpu.memory_space<vmem>>, %arg11: memref<1x16x1xf32, #tpu.memory_space<vmem>>) attributes {dimension_semantics = [#tpu.dimension_semantics<parallel>, #tpu.dimension_semantics<arbitrary>], iteration_bounds = array<i64: 2, 1>, scalar_prefetch = 0 : i64, scratch_operands = 0 : i64, tpu.core_type = #tpu.core_type<tc>, window_params = [{transform_indices = @transform_0, window_bounds = array<i64: 1, 40, 256>}, {transform_indices = @transform_1, window_bounds = array<i64: 1, 40, 16>}, {pipeline_mode = #tpu.pipeline_mode<synchronous>, transform_indices = @transform_2, window_bounds = array<i64: 24, 40>}, {pipeline_mode = #tpu.pipeline_mode<synchronous>, transform_indices = @transform_3, window_bounds = array<i64: 32, 40>}, {pipeline_mode = #tpu.pipeline_mode<synchronous>, transform_indices = @transform_4, window_bounds = array<i64: 8, 40>}, {pipeline_mode = #tpu.pipeline_mode<synchronous>, transform_indices = @transform_5, window_bounds = array<i64: 16, 1>}, {transform_indices = @transform_6, window_bounds = array<i64: 1, 16, 256>}, {transform_indices = @transform_7, window_bounds = array<i64: 1, 16, 32>}, {transform_indices = @transform_8, window_bounds = array<i64: 1, 16, 32>}, {transform_indices = @transform_9, window_bounds = array<i64: 1, 16, 1>}]} {
    %c0 = arith.constant 0 : index
    %c0_0 = arith.constant 0 : index
    %c0_1 = arith.constant 0 : index
    %0 = vector.load %arg2[%c0, %c0_0, %c0_1] : memref<1x40x256xbf16, #tpu.memory_space<vmem>>, vector<1x40x256xbf16>
    %1 = vector.shape_cast %0 : vector<1x40x256xbf16> to vector<40x256xbf16>
    %c0_2 = arith.constant 0 : index
    %c0_3 = arith.constant 0 : index
    %2 = vector.load %arg4[%c0_2, %c0_3] : memref<24x40xbf16, #tpu.memory_space<vmem>>, vector<24x40xbf16>
    %cst = arith.constant dense<0.000000e+00> : vector<24x256xf32>
    %3 = tpu.matmul %2, %1, %cst {dimension_numbers = #tpu.dot_dimension_numbers<[1], [0], [0], [1], [0, 0, 1, 1], [], []>} : vector<24x40xbf16>, vector<40x256xbf16>, vector<24x256xf32> -> vector<24x256xf32>
    %c0_4 = arith.constant 0 : index
    %c0_5 = arith.constant 0 : index
    %4 = vector.load %arg5[%c0_4, %c0_5] : memref<32x40xbf16, #tpu.memory_space<vmem>>, vector<32x40xbf16>
    %cst_6 = arith.constant dense<0.000000e+00> : vector<32x256xf32>
    %5 = tpu.matmul %4, %1, %cst_6 {dimension_numbers = #tpu.dot_dimension_numbers<[1], [0], [0], [1], [0, 0, 1, 1], [], []>} : vector<32x40xbf16>, vector<40x256xbf16>, vector<32x256xf32> -> vector<32x256xf32>
    %6 = vector.extract_strided_slice %3 {offsets = [0, 0], sizes = [16, 256], strides = [1, 1]} : vector<24x256xf32> to vector<16x256xf32>
    %7 = vector.extract_strided_slice %3 {offsets = [16, 0], sizes = [8, 256], strides = [1, 1]} : vector<24x256xf32> to vector<8x256xf32>
    %c0_7 = arith.constant 0 : index
    %c0_8 = arith.constant 0 : index
    %c0_9 = arith.constant 0 : index
    %8 = vector.load %arg3[%c0_7, %c0_8, %c0_9] : memref<1x40x16xbf16, #tpu.memory_space<vmem>>, vector<1x40x16xbf16>
    %9 = vector.shape_cast %8 : vector<1x40x16xbf16> to vector<40x16xbf16>
    %c0_10 = arith.constant 0 : index
    %c0_11 = arith.constant 0 : index
    %10 = vector.load %arg6[%c0_10, %c0_11] : memref<8x40xbf16, #tpu.memory_space<vmem>>, vector<8x40xbf16>
    %cst_12 = arith.constant dense<0.000000e+00> : vector<16x8xf32>
    %11 = tpu.matmul %9, %10, %cst_12 {dimension_numbers = #tpu.dot_dimension_numbers<[0], [1], [1], [0], [0, 1, 1, 0], [], []>} : vector<40x16xbf16>, vector<8x40xbf16>, vector<16x8xf32> -> vector<16x8xf32>
    %12 = arith.truncf %11 : vector<16x8xf32> to vector<16x8xbf16>
    %13 = arith.truncf %7 : vector<8x256xf32> to vector<8x256xbf16>
    %cst_13 = arith.constant dense<0.000000e+00> : vector<16x256xf32>
    %14 = tpu.matmul %12, %13, %cst_13 {dimension_numbers = #tpu.dot_dimension_numbers<[1], [0], [0], [1], [0, 0, 1, 1], [], []>} : vector<16x8xbf16>, vector<8x256xbf16>, vector<16x256xf32> -> vector<16x256xf32>
    %c0_14 = arith.constant 0 : index
    %c0_15 = arith.constant 0 : index
    %15 = vector.load %arg7[%c0_14, %c0_15] : memref<16x1xf32, #tpu.memory_space<vmem>>, vector<16x1xf32>
    %cst_16 = arith.constant 0.000000e+00 : f32
    %cst_17 = arith.constant 1.000000e+00 : f32
    %16 = vector.broadcast %cst_16 : f32 to vector<16x1xf32>
    %17 = arith.maximumf %16, %15 : vector<16x1xf32>
    %18 = vector.broadcast %cst_17 : f32 to vector<16x1xf32>
    %19 = arith.minimumf %18, %17 : vector<16x1xf32>
    %20 = vector.broadcast %19 : vector<16x1xf32> to vector<16x256xf32>
    %21 = arith.mulf %20, %14 : vector<16x256xf32>
    %22 = arith.addf %21, %6 : vector<16x256xf32>
    %cst_18 = arith.constant 1.000000e-01 : f32
    %23 = vector.broadcast %cst_18 : f32 to vector<16x256xf32>
    %24 = arith.mulf %22, %23 : vector<16x256xf32>
    %cst_19 = arith.constant dense<0xFF800000> : vector<256xf32>
    %25 = vector.multi_reduction <maximumf>, %24, %cst_19 [0] : vector<16x256xf32> to vector<256xf32>
    %cst_20 = arith.constant 0xFF800000 : f32
    %26 = vector.broadcast %cst_20 : f32 to vector<256xf32>
    %27 = arith.maximumf %26, %25 : vector<256xf32>
    %28 = vector.shape_cast %27 : vector<256xf32> to vector<1x256xf32>
    %29 = vector.broadcast %28 : vector<1x256xf32> to vector<16x256xf32>
    %30 = arith.subf %24, %29 : vector<16x256xf32>
    %31 = math.exp %30 : vector<16x256xf32>
    %cst_21 = arith.constant dense<0.000000e+00> : vector<256xf32>
    %32 = vector.multi_reduction <add>, %31, %cst_21 [0] : vector<16x256xf32> to vector<256xf32>
    %33 = vector.shape_cast %32 : vector<256xf32> to vector<1x256xf32>
    %34 = vector.broadcast %33 : vector<1x256xf32> to vector<16x256xf32>
    %35 = arith.divf %31, %34 : vector<16x256xf32>
    %c0_22 = arith.constant 0 : index
    %c0_23 = arith.constant 0 : index
    %c0_24 = arith.constant 0 : index
    %36 = vector.load %arg8[%c0_22, %c0_23, %c0_24] : memref<1x16x256xf32, #tpu.memory_space<vmem>>, vector<1x16x256xf32>
    %37 = vector.shape_cast %36 : vector<1x16x256xf32> to vector<16x256xf32>
    %38 = vector.shape_cast %35 : vector<16x256xf32> to vector<1x16x256xf32>
    tpu.vector_store %arg8[%c0_22, %c0_23, %c0_24], %38 {strides = array<i32>} : memref<1x16x256xf32, #tpu.memory_space<vmem>>, vector<1x16x256xf32>,
    %39 = arith.truncf %35 : vector<16x256xf32> to vector<16x256xbf16>
    %40 = arith.truncf %5 : vector<32x256xf32> to vector<32x256xbf16>
    %cst_25 = arith.constant dense<0.000000e+00> : vector<16x32xf32>
    %41 = tpu.matmul %39, %40, %cst_25 {dimension_numbers = #tpu.dot_dimension_numbers<[1], [1], [0], [0], [0, 0, 1, 0], [], []>} : vector<16x256xbf16>, vector<32x256xbf16>, vector<16x32xf32> -> vector<16x32xf32>
    %42 = arith.mulf %35, %35 : vector<16x256xf32>
    %43 = arith.truncf %42 : vector<16x256xf32> to vector<16x256xbf16>
    %44 = arith.mulf %5, %5 : vector<32x256xf32>
    %45 = arith.truncf %44 : vector<32x256xf32> to vector<32x256xbf16>
    %cst_26 = arith.constant dense<0.000000e+00> : vector<16x32xf32>
    %46 = tpu.matmul %43, %45, %cst_26 {dimension_numbers = #tpu.dot_dimension_numbers<[1], [1], [0], [0], [0, 0, 1, 0], [], []>} : vector<16x256xbf16>, vector<32x256xbf16>, vector<16x32xf32> -> vector<16x32xf32>
    %cst_27 = arith.constant dense<0.000000e+00> : vector<16xf32>
    %47 = vector.multi_reduction <add>, %35, %cst_27 [1] : vector<16x256xf32> to vector<16xf32>
    %48 = vector.shape_cast %47 : vector<16xf32> to vector<16x1xf32>
    %c0_i32 = arith.constant 0 : i32
    %49 = arith.cmpi eq, %arg1, %c0_i32 : i32
    %50 = arith.extui %49 : i1 to i32
    %c0_i32_28 = arith.constant 0 : i32
    %51 = arith.cmpi ne, %50, %c0_i32_28 : i32
    scf.if %51 {
      %cst_47 = arith.constant 0.000000e+00 : f32
      %70 = vector.broadcast %cst_47 : f32 to vector<1x16x32xf32>
      %c0_48 = arith.constant 0 : index
      %c0_49 = arith.constant 0 : index
      %c0_50 = arith.constant 0 : index
      %71 = vector.load %arg9[%c0_48, %c0_49, %c0_50] : memref<1x16x32xf32, #tpu.memory_space<vmem>>, vector<1x16x32xf32>
      tpu.vector_store %arg9[%c0_48, %c0_49, %c0_50], %70 {strides = array<i32>} : memref<1x16x32xf32, #tpu.memory_space<vmem>>, vector<1x16x32xf32>,
      %cst_51 = arith.constant 0.000000e+00 : f32
      %72 = vector.broadcast %cst_51 : f32 to vector<1x16x32xf32>
      %c0_52 = arith.constant 0 : index
      %c0_53 = arith.constant 0 : index
      %c0_54 = arith.constant 0 : index
      %73 = vector.load %arg10[%c0_52, %c0_53, %c0_54] : memref<1x16x32xf32, #tpu.memory_space<vmem>>, vector<1x16x32xf32>
      tpu.vector_store %arg10[%c0_52, %c0_53, %c0_54], %72 {strides = array<i32>} : memref<1x16x32xf32, #tpu.memory_space<vmem>>, vector<1x16x32xf32>,
      %cst_55 = arith.constant 0.000000e+00 : f32
      %74 = vector.broadcast %cst_55 : f32 to vector<1x16x1xf32>
      %c0_56 = arith.constant 0 : index
      %c0_57 = arith.constant 0 : index
      %c0_58 = arith.constant 0 : index
      %75 = vector.load %arg11[%c0_56, %c0_57, %c0_58] : memref<1x16x1xf32, #tpu.memory_space<vmem>>, vector<1x16x1xf32>
      tpu.vector_store %arg11[%c0_56, %c0_57, %c0_58], %74 {strides = array<i32>} : memref<1x16x1xf32, #tpu.memory_space<vmem>>, vector<1x16x1xf32>,
    } else {
    }
    %c0_29 = arith.constant 0 : index
    %c0_30 = arith.constant 0 : index
    %c0_31 = arith.constant 0 : index
    %52 = vector.load %arg9[%c0_29, %c0_30, %c0_31] : memref<1x16x32xf32, #tpu.memory_space<vmem>>, vector<1x16x32xf32>
    %53 = vector.shape_cast %52 : vector<1x16x32xf32> to vector<16x32xf32>
    %54 = arith.addf %53, %41 : vector<16x32xf32>
    %c0_32 = arith.constant 0 : index
    %c0_33 = arith.constant 0 : index
    %c0_34 = arith.constant 0 : index
    %55 = vector.load %arg9[%c0_32, %c0_33, %c0_34] : memref<1x16x32xf32, #tpu.memory_space<vmem>>, vector<1x16x32xf32>
    %56 = vector.shape_cast %55 : vector<1x16x32xf32> to vector<16x32xf32>
    %57 = vector.shape_cast %54 : vector<16x32xf32> to vector<1x16x32xf32>
    tpu.vector_store %arg9[%c0_32, %c0_33, %c0_34], %57 {strides = array<i32>} : memref<1x16x32xf32, #tpu.memory_space<vmem>>, vector<1x16x32xf32>,
    %c0_35 = arith.constant 0 : index
    %c0_36 = arith.constant 0 : index
    %c0_37 = arith.constant 0 : index
    %58 = vector.load %arg10[%c0_35, %c0_36, %c0_37] : memref<1x16x32xf32, #tpu.memory_space<vmem>>, vector<1x16x32xf32>
    %59 = vector.shape_cast %58 : vector<1x16x32xf32> to vector<16x32xf32>
    %60 = arith.addf %59, %46 : vector<16x32xf32>
    %c0_38 = arith.constant 0 : index
    %c0_39 = arith.constant 0 : index
    %c0_40 = arith.constant 0 : index
    %61 = vector.load %arg10[%c0_38, %c0_39, %c0_40] : memref<1x16x32xf32, #tpu.memory_space<vmem>>, vector<1x16x32xf32>
    %62 = vector.shape_cast %61 : vector<1x16x32xf32> to vector<16x32xf32>
    %63 = vector.shape_cast %60 : vector<16x32xf32> to vector<1x16x32xf32>
    tpu.vector_store %arg10[%c0_38, %c0_39, %c0_40], %63 {strides = array<i32>} : memref<1x16x32xf32, #tpu.memory_space<vmem>>, vector<1x16x32xf32>,
    %c0_41 = arith.constant 0 : index
    %c0_42 = arith.constant 0 : index
    %c0_43 = arith.constant 0 : index
    %64 = vector.load %arg11[%c0_41, %c0_42, %c0_43] : memref<1x16x1xf32, #tpu.memory_space<vmem>>, vector<1x16x1xf32>
    %65 = vector.shape_cast %64 : vector<1x16x1xf32> to vector<16x1xf32>
    %66 = arith.addf %65, %48 : vector<16x1xf32>
    %c0_44 = arith.constant 0 : index
    %c0_45 = arith.constant 0 : index
    %c0_46 = arith.constant 0 : index
    %67 = vector.load %arg11[%c0_44, %c0_45, %c0_46] : memref<1x16x1xf32, #tpu.memory_space<vmem>>, vector<1x16x1xf32>
    %68 = vector.shape_cast %67 : vector<1x16x1xf32> to vector<16x1xf32>
    %69 = vector.shape_cast %66 : vector<16x1xf32> to vector<1x16x1xf32>
    tpu.vector_store %arg11[%c0_44, %c0_45, %c0_46], %69 {strides = array<i32>} : memref<1x16x1xf32, #tpu.memory_space<vmem>>, vector<1x16x1xf32>,
    return
  }
  func.func @transform_0(%arg0: i32, %arg1: i32) -> (i32, i32, i32) {
    %c0_i32 = arith.constant 0 : i32
    %c0_i32_0 = arith.constant 0 : i32
    return %arg0, %c0_i32, %arg1 : i32, i32, i32
  }
  func.func @transform_1(%arg0: i32, %arg1: i32) -> (i32, i32, i32) {
    %c0_i32 = arith.constant 0 : i32
    %c0_i32_0 = arith.constant 0 : i32
    %c0_i32_1 = arith.constant 0 : i32
    return %arg0, %c0_i32, %c0_i32_0 : i32, i32, i32
  }
  func.func @transform_2(%arg0: i32, %arg1: i32) -> (i32, i32) {
    %c0_i32 = arith.constant 0 : i32
    %c0_i32_0 = arith.constant 0 : i32
    %c0_i32_1 = arith.constant 0 : i32
    return %c0_i32, %c0_i32_0 : i32, i32
  }
  func.func @transform_3(%arg0: i32, %arg1: i32) -> (i32, i32) {
    %c0_i32 = arith.constant 0 : i32
    %c0_i32_0 = arith.constant 0 : i32
    %c0_i32_1 = arith.constant 0 : i32
    return %c0_i32, %c0_i32_0 : i32, i32
  }
  func.func @transform_4(%arg0: i32, %arg1: i32) -> (i32, i32) {
    %c0_i32 = arith.constant 0 : i32
    %c0_i32_0 = arith.constant 0 : i32
    %c0_i32_1 = arith.constant 0 : i32
    return %c0_i32, %c0_i32_0 : i32, i32
  }
  func.func @transform_5(%arg0: i32, %arg1: i32) -> (i32, i32) {
    %c0_i32 = arith.constant 0 : i32
    %c0_i32_0 = arith.constant 0 : i32
    %c0_i32_1 = arith.constant 0 : i32
    return %c0_i32, %c0_i32_0 : i32, i32
  }
  func.func @transform_6(%arg0: i32, %arg1: i32) -> (i32, i32, i32) {
    %c0_i32 = arith.constant 0 : i32
    %c0_i32_0 = arith.constant 0 : i32
    return %arg0, %c0_i32, %arg1 : i32, i32, i32
  }
  func.func @transform_7(%arg0: i32, %arg1: i32) -> (i32, i32, i32) {
    %c0_i32 = arith.constant 0 : i32
    %c0_i32_0 = arith.constant 0 : i32
    %c0_i32_1 = arith.constant 0 : i32
    return %arg0, %c0_i32, %c0_i32_0 : i32, i32, i32
  }
  func.func @transform_8(%arg0: i32, %arg1: i32) -> (i32, i32, i32) {
    %c0_i32 = arith.constant 0 : i32
    %c0_i32_0 = arith.constant 0 : i32
    %c0_i32_1 = arith.constant 0 : i32
    return %arg0, %c0_i32, %c0_i32_0 : i32, i32, i32
  }
  func.func @transform_9(%arg0: i32, %arg1: i32) -> (i32, i32, i32) {
    %c0_i32 = arith.constant 0 : i32
    %c0_i32_0 = arith.constant 0 : i32
    %c0_i32_1 = arith.constant 0 : i32
    return %arg0, %c0_i32, %c0_i32_0 : i32, i32, i32
  }
}

module attributes {stable_mosaic.version = 11 : i64} {
  func.func @_phase2_kernel(%arg0: i32, %arg1: i32, %arg2: memref<1x40x256xbf16, #tpu.memory_space<vmem>>, %arg3: memref<1x16x256xf32, #tpu.memory_space<vmem>>, %arg4: memref<1x16x64xbf16, #tpu.memory_space<vmem>>, %arg5: memref<32x40xbf16, #tpu.memory_space<vmem>>, %arg6: memref<1xf32, #tpu.memory_space<smem>>, %arg7: memref<1x32x256xf32, #tpu.memory_space<vmem>>) attributes {dimension_semantics = [#tpu.dimension_semantics<parallel>, #tpu.dimension_semantics<parallel>], iteration_bounds = array<i64: 2, 1>, scalar_prefetch = 0 : i64, scratch_operands = 0 : i64, tpu.core_type = #tpu.core_type<tc>, window_params = [{transform_indices = @transform_0, window_bounds = array<i64: 1, 40, 256>}, {transform_indices = @transform_1, window_bounds = array<i64: 1, 16, 256>}, {transform_indices = @transform_2, window_bounds = array<i64: 1, 16, 64>}, {pipeline_mode = #tpu.pipeline_mode<synchronous>, transform_indices = @transform_3, window_bounds = array<i64: 32, 40>}, {transform_indices = @transform_4, window_bounds = array<i64: 1>}, {transform_indices = @transform_5, window_bounds = array<i64: 1, 32, 256>}]} {
    %c0 = arith.constant 0 : index
    %c0_0 = arith.constant 0 : index
    %c0_1 = arith.constant 0 : index
    %0 = vector.load %arg2[%c0, %c0_0, %c0_1] : memref<1x40x256xbf16, #tpu.memory_space<vmem>>, vector<1x40x256xbf16>
    %1 = vector.shape_cast %0 : vector<1x40x256xbf16> to vector<40x256xbf16>
    %c0_2 = arith.constant 0 : index
    %c0_3 = arith.constant 0 : index
    %2 = vector.load %arg5[%c0_2, %c0_3] : memref<32x40xbf16, #tpu.memory_space<vmem>>, vector<32x40xbf16>
    %cst = arith.constant dense<0.000000e+00> : vector<32x256xf32>
    %3 = tpu.matmul %2, %1, %cst {dimension_numbers = #tpu.dot_dimension_numbers<[1], [0], [0], [1], [0, 0, 1, 1], [], []>} : vector<32x40xbf16>, vector<40x256xbf16>, vector<32x256xf32> -> vector<32x256xf32>
    %c0_4 = arith.constant 0 : index
    %c0_5 = arith.constant 0 : index
    %c0_6 = arith.constant 0 : index
    %4 = vector.load %arg3[%c0_4, %c0_5, %c0_6] : memref<1x16x256xf32, #tpu.memory_space<vmem>>, vector<1x16x256xf32>
    %5 = vector.shape_cast %4 : vector<1x16x256xf32> to vector<16x256xf32>
    %6 = arith.truncf %5 : vector<16x256xf32> to vector<16x256xbf16>
    %c0_7 = arith.constant 0 : index
    %c0_8 = arith.constant 0 : index
    %c0_9 = arith.constant 0 : index
    %7 = vector.load %arg4[%c0_7, %c0_8, %c0_9] : memref<1x16x64xbf16, #tpu.memory_space<vmem>>, vector<1x16x64xbf16>
    %8 = vector.shape_cast %7 : vector<1x16x64xbf16> to vector<16x64xbf16>
    %cst_10 = arith.constant dense<0.000000e+00> : vector<64x256xf32>
    %9 = tpu.matmul %8, %6, %cst_10 {dimension_numbers = #tpu.dot_dimension_numbers<[0], [0], [1], [1], [0, 1, 1, 1], [], []>} : vector<16x64xbf16>, vector<16x256xbf16>, vector<64x256xf32> -> vector<64x256xf32>
    %10 = vector.extract_strided_slice %9 {offsets = [0, 0], sizes = [32, 256], strides = [1, 1]} : vector<64x256xf32> to vector<32x256xf32>
    %11 = vector.extract_strided_slice %9 {offsets = [32, 0], sizes = [32, 256], strides = [1, 1]} : vector<64x256xf32> to vector<32x256xf32>
    %12 = arith.mulf %3, %10 : vector<32x256xf32>
    %13 = arith.subf %12, %11 : vector<32x256xf32>
    %14 = arith.extf %1 : vector<40x256xbf16> to vector<40x256xf32>
    %15 = vector.extract_strided_slice %14 {offsets = [0, 0], sizes = [32, 256], strides = [1, 1]} : vector<40x256xf32> to vector<32x256xf32>
    %c0_11 = arith.constant 0 : index
    %16 = memref.load %arg6[%c0_11] : memref<1xf32, #tpu.memory_space<smem>>
    %17 = vector.broadcast %16 : f32 to vector<32x256xf32>
    %18 = arith.mulf %17, %13 : vector<32x256xf32>
    %19 = arith.addf %15, %18 : vector<32x256xf32>
    %c0_12 = arith.constant 0 : index
    %c0_13 = arith.constant 0 : index
    %c0_14 = arith.constant 0 : index
    %20 = vector.load %arg7[%c0_12, %c0_13, %c0_14] : memref<1x32x256xf32, #tpu.memory_space<vmem>>, vector<1x32x256xf32>
    %21 = vector.shape_cast %20 : vector<1x32x256xf32> to vector<32x256xf32>
    %22 = vector.shape_cast %19 : vector<32x256xf32> to vector<1x32x256xf32>
    tpu.vector_store %arg7[%c0_12, %c0_13, %c0_14], %22 {strides = array<i32>} : memref<1x32x256xf32, #tpu.memory_space<vmem>>, vector<1x32x256xf32>,
    return
  }
  func.func @transform_0(%arg0: i32, %arg1: i32) -> (i32, i32, i32) {
    %c0_i32 = arith.constant 0 : i32
    %c0_i32_0 = arith.constant 0 : i32
    return %arg0, %c0_i32, %arg1 : i32, i32, i32
  }
  func.func @transform_1(%arg0: i32, %arg1: i32) -> (i32, i32, i32) {
    %c0_i32 = arith.constant 0 : i32
    %c0_i32_0 = arith.constant 0 : i32
    return %arg0, %c0_i32, %arg1 : i32, i32, i32
  }
  func.func @transform_2(%arg0: i32, %arg1: i32) -> (i32, i32, i32) {
    %c0_i32 = arith.constant 0 : i32
    %c0_i32_0 = arith.constant 0 : i32
    %c0_i32_1 = arith.constant 0 : i32
    return %arg0, %c0_i32, %c0_i32_0 : i32, i32, i32
  }
  func.func @transform_3(%arg0: i32, %arg1: i32) -> (i32, i32) {
    %c0_i32 = arith.constant 0 : i32
    %c0_i32_0 = arith.constant 0 : i32
    %c0_i32_1 = arith.constant 0 : i32
    return %c0_i32, %c0_i32_0 : i32, i32
  }
  func.func @transform_4(%arg0: i32, %arg1: i32) -> i32 {
    %c0_i32 = arith.constant 0 : i32
    %c0_i32_0 = arith.constant 0 : i32
    return %c0_i32 : i32
  }
  func.func @transform_5(%arg0: i32, %arg1: i32) -> (i32, i32, i32) {
    %c0_i32 = arith.constant 0 : i32
    %c0_i32_0 = arith.constant 0 : i32
    return %arg0, %c0_i32, %arg1 : i32, i32, i32
  }
}

</mosaic_0001>

<bundles_post_ra>
// kernel: attnorm_forward.3
= control target key start
LH: loop header
LB: loop body
LE: loop exit
PB: predicated region body
PF: predicated region fallthrough
CT: control target
= control target key end

     0   :  { %s842_s20 = smov 0   ;;  %s844_s21 = smov 0   ;;  %s927_s0 = inlined_call_operand.vmem [shape: bf16[2,40,256], index: 0, kind: input, shape index: {}]   ;;  %s928_s1 = inlined_call_operand.vmem [shape: f32[2,16,256], index: 1, kind: input, shape index: {}]   ;;  %s929_s2 = inlined_call_operand.vmem [shape: bf16[2,16,64], index: 2, kind: input, shape index: {}]   ;;  %s930_s3 = inlined_call_operand.vmem [shape: bf16[32,40], index: 3, kind: input, shape index: {}]   ;;  %s931_s4 = inlined_call_operand.<no memory space> [shape: f32[1], index: 4, kind: input, shape index: {}]   ;;  %s932_s5 = inlined_call_operand.vmem [shape: f32[2,32,256], index: 5, kind: output, shape index: {}]  }
   0x1   :  { %10 = sst [smem:[#allocation2]] %s931_s4  ;;  %s846_s22 = smov 0  }
   0x2 LB: > { %s28_s4 = sadd.s32 1, %s802_s21  ;;  %p720_p0 = scmp.ge.s32.totalorder %s806_s22, 1  ;;  %s806_s22 = sphi %s846_s22, %s16_s22   ;;  %s802_s21 = sphi %s844_s21, %s934_s21   ;;  %s798_s20 = sphi %s842_s20, %s933_s20  }
   0x3   : > { %p30_p1 = scmp.ge.s32.totalorder %s28_s4, 2  ;;  %p236_p2 = scmp.lt.s32.totalorder %s806_s22, 3 }
   0x5   : > { %s936_s4 = smov (%p30_p1, %s28_s4), 0  ;;  %p237_p3 = pnand %p720_p0, %p236_p2 }
   0x6   : > { %p287_p4 = scmp.lt.s32.totalorder (!%p237_p3), %s798_s20, 1  ;;  %s573_s14 = sld [smem:[#allocation2]] (!%p237_p3) }
   0x7   : > { %240 = sbr.rel (%p237_p3) target bundleno = 345 (0x159), region = 40 }
   0xc   : > { %v808_v0 = vmov 0   ;;  %s938_s20 = smov (!%p287_p4, %s798_s20), 1  ;;  %vm373_vm0 = vcmask 1043456   ;;  %v782_v20 = vld [vmem:[%s930_s3] sm:$0xff]   ;;  %vm366_vm1 = vcmask 326656   ;;  %v783_v21 = vld [vmem:[%s930_s3 + $0x8] sm:$0xff]   ;;  %v574_v41 = vstv %s573_s14 }
   0xd   : > { %412 = vmatprep.mubr.bf16.mxu0 %v808_v0  ;;  %508 = vmatprep.mubr.bf16.mxu1 %v808_v0  ;;  %s747_s23 = sshll.u32 %s938_s20, 3  ;;  %s749_s27 = smul.u32 40, %s938_s20  ;;  %vm463_vm2 = vcmask 130048  }
   0xe   : > { %s310_s26 = scalar_lea.vmem %s929_s2, %s747_s23  ;;  %s746_s28 = sshll.u32 %s938_s20, 5 }
   0xf   : > { %v775_v1 = vld [vmem:[%s310_s26] sm:$0xff]   ;;  %s294_s6 = scalar_lea.vmem %s927_s0, %s749_s27  ;;  %s304_s9 = scalar_lea.vmem %s928_s1, %s746_s28 }
  0x10   : > { %447 = vxpose.xlu0.c.b16.start.end [1/1] (short) (narrow) %v775_v1, 64  ;;  %v326_v2 = vld [vmem:[%s294_s6 + $0x20] sm:$0xff]  ;;  %v874_v3 = vld [vmem:[%s294_s6 + $0x10] sm:$0xff]  ;;  %v876_v4 = vld [vmem:[%s294_s6 + $0x18] sm:$0xff]  ;;  %s748_s15 = sshll.u32 %s938_s20, 6 }
  0x11   : > { %v735_v5 = vcombine.high %v326_v2, %v326_v2  ;;  %v734_v6 = vcombine.low %v326_v2, %v326_v2  ;;  %v733_v7 = vcombine.high %v874_v3, %v876_v4  ;;  %v880_v8 = vld [vmem:[%s294_s6] sm:$0xff]  ;;  %v882_v9 = vld [vmem:[%s294_s6 + $0x8] sm:$0xff]  ;;  %v436_v11 = vld [vmem:[%s304_s9 + $0x18] sm:$0xff]  ;;  %v732_v17 = vcombine.low %v874_v3, %v876_v4  ;;  %s902_s18 = scalar_lea.vmem %s932_s5, %s748_s15 }
  0x12   : > { %v434_v10 = vld [vmem:[%s304_s9 + $0x8] sm:$0xff]  ;;  %v433_v12 = vld [vmem:[%s304_s9] sm:$0xff]  ;;  %v435_v13 = vld [vmem:[%s304_s9 + $0x10] sm:$0xff]  ;;  %v731_v18 = vcombine.high %v880_v8, %v882_v9  ;;  %v730_v19 = vcombine.low %v880_v8, %v882_v9  ;;  %v565_v44 = vunpack.c.l.bf16 %v880_v8  ;;  %v566_v50 = vunpack.c.h.bf16 %v880_v8 }
  0x13   : > { %736 = vmatprep.subr.msk.bf16.mxu0 %vm373_vm0, %v735_v5  ;;  %v375_v14 = vsel %vm373_vm0, %v734_v6, 0  ;;  %v438_v15 = vpack.c.bf16 %v436_v11, %v434_v10  ;;  %v437_v16 = vpack.c.bf16 %v435_v13, %v433_v12  ;;  %v567_v52 = vunpack.c.l.bf16 %v882_v9 }
  0x14   : > { %391 = vmatpush1.bf16.msra.mxu0 %v375_v14  ;;  %v568_v59 = vunpack.c.h.bf16 %v882_v9  ;;  %v569_v1 = vunpack.c.l.bf16 %v874_v3  ;;  %v570_v9 = vunpack.c.h.bf16 %v874_v3 }
  0x15   : > { %392 = vmatprep.subr.bf16.mxu0 %v733_v7  ;;  %490 = vmatprep.subr.bf16.mxu1 %v438_v15 }
  0x16   : > { %491 = vmatpush1.bf16.msra.mxu1 %v437_v16  ;;  %v571_v16 = vunpack.c.l.bf16 %v876_v4 }
  0x18   : > { %393 = vmatpush1.bf16.msra.mxu0 %v732_v17 }
  0x19   : > { %394 = vmatprep.subr.bf16.mxu0 %v731_v18 }
  0x1c   : > { %395 = vmatpush1.bf16.msra.mxu0 %v730_v19 }
  0x1f   : > { %737 = vmatmul.mubr.msk.bf16.vlgmr.msra.gmra.mxu0 %vm366_vm1, %v782_v20 }
  0x20   : > { %422 = vmatprep.mubr.bf16.mxu0 %v808_v0 }
  0x27   : > { %738 = vmatmul.mubr.msk.bf16.gmra.mxu0 %vm366_vm1, %v783_v21 }
  0x72   : > { %v455_v22 = vpop.trf.xlu0 }
  0x73   : > { %740 = vmatmul.mubr.msk.bf16.vlgmr.msra.gmra.mxu1 %vm463_vm2, %v455_v22 }
  0x74   : > { %518 = vmatprep.mubr.bf16.mxu1 %v808_v0 }
  0x76   : > { %v456_v23 = vpop.trf.xlu0 }
  0x7a   : > { %v457_v24 = vpop.trf.xlu0 }
  0x7b   : > { %741 = vmatmul.mubr.msk.bf16.gmra.mxu1 %vm463_vm2, %v456_v23 }
  0x7c   : > { %528 = vmatprep.mubr.bf16.mxu1 %v808_v0 }
  0x7e   : > { %v458_v25 = vpop.trf.xlu0 }
  0x83   : > { %742 = vmatmul.mubr.msk.bf16.gmra.mxu1 %vm463_vm2, %v457_v24  ;;  %v572_v24 = vunpack.c.h.bf16 %v876_v4 }
  0x84   : > { %538 = vmatprep.mubr.bf16.mxu1 %v808_v0 }
  0x8b   : > { %743 = vmatmul.mubr.msk.bf16.gmra.mxu1 %vm463_vm2, %v458_v25 }
  0xdf   : > { %v414_v26 = vpop.f32.mrf.mxu0 }
  0xe1   : > { %v416_v28 = vpop.f32.mrf.mxu0 }
  0xe3   : > { %v418_v31 = vpop.f32.mrf.mxu0 }
  0xe5   : > { %v420_v34 = vpop.f32.mrf.mxu0 }
  0xe7   : > { %v424_v37 = vpop.f32.mrf.mxu0 }
  0xe9   : > { %v426_v45 = vpop.f32.mrf.mxu0 }
  0xeb   : > { %v428_v57 = vpop.f32.mrf.mxu0 }
  0xed   : > { %v430_v8 = vpop.f32.mrf.mxu0 }
 0x133   : > { %v510_v27 = vpop.f32.mrf.mxu1 }
 0x134   : > { %v549_v39 = vmul.f32 %v510_v27, %v414_v26 }
 0x135   : > { %v512_v29 = vpop.f32.mrf.mxu1 }
 0x136   : > { %v550_v42 = vmul.f32 %v512_v29, %v416_v28 }
 0x137   : > { %v514_v30 = vpop.f32.mrf.mxu1 }
 0x138   : > { %v551_v47 = vmul.f32 %v514_v30, %v418_v31 }
 0x139   : > { %v516_v32 = vpop.f32.mrf.mxu1 }
 0x13a   : > { %v552_v53 = vmul.f32 %v516_v32, %v420_v34 }
 0x13b   : > { %v520_v33 = vpop.f32.mrf.mxu1 }
 0x13c   : > { %v553_v60 = vmul.f32 %v520_v33, %v424_v37 }
 0x13d   : > { %v522_v35 = vpop.f32.mrf.mxu1 }
 0x13e   : > { %v554_v2 = vmul.f32 %v522_v35, %v426_v45 }
 0x13f   : > { %v524_v36 = vpop.f32.mrf.mxu1 }
 0x140   : > { %v555_v11 = vmul.f32 %v524_v36, %v428_v57 }
 0x141   : > { %v526_v38 = vpop.f32.mrf.mxu1 }
 0x142   : > { %v556_v17 = vmul.f32 %v526_v38, %v430_v8 }
 0x143   : > { %v530_v40 = vpop.f32.mrf.mxu1 }
 0x144   : > { %v557_v43 = vsub.f32 %v549_v39, %v530_v40 }
 0x145   : > { %v532_v46 = vpop.f32.mrf.mxu1 }
 0x146   : > { %v575_v48 = vmul.f32 %v574_v41, %v557_v43  ;;  %v558_v49 = vsub.f32 %v550_v42, %v532_v46 }
 0x147   : > { %v534_v51 = vpop.f32.mrf.mxu1 }
 0x148   : > { %v583_v54 = vadd.f32 %v575_v48, %v565_v44  ;;  %v576_v55 = vmul.f32 %v574_v41, %v558_v49  ;;  %v559_v56 = vsub.f32 %v551_v47, %v534_v51 }
 0x149   : > { %v536_v58 = vpop.f32.mrf.mxu1 }
 0x14a   : > { %591 = vst [vmem:[%s902_s18] sm:$0xff] %v583_v54  ;;  %v584_v61 = vadd.f32 %v576_v55, %v566_v50  ;;  %v577_v62 = vmul.f32 %v574_v41, %v559_v56  ;;  %v560_v63 = vsub.f32 %v552_v53, %v536_v58 }
 0x14b   : > { %v540_v0 = vpop.f32.mrf.mxu1 }
 0x14c   : > { %592 = vst [vmem:[%s902_s18 + $0x8] sm:$0xff] %v584_v61  ;;  %v585_v5 = vadd.f32 %v577_v62, %v567_v52  ;;  %v578_v6 = vmul.f32 %v574_v41, %v560_v63  ;;  %v561_v7 = vsub.f32 %v553_v60, %v540_v0 }
 0x14d   : > { %v542_v10 = vpop.f32.mrf.mxu1 }
 0x14e   : > { %593 = vst [vmem:[%s902_s18 + $0x10] sm:$0xff] %v585_v5  ;;  %v586_v12 = vadd.f32 %v578_v6, %v568_v59  ;;  %v579_v13 = vmul.f32 %v574_v41, %v561_v7  ;;  %v562_v14 = vsub.f32 %v554_v2, %v542_v10 }
 0x14f   : > { %v544_v15 = vpop.f32.mrf.mxu1 }
 0x150   : > { %594 = vst [vmem:[%s902_s18 + $0x18] sm:$0xff] %v586_v12  ;;  %v587_v18 = vadd.f32 %v579_v13, %v569_v1  ;;  %v580_v19 = vmul.f32 %v574_v41, %v562_v14  ;;  %v563_v20 = vsub.f32 %v555_v11, %v544_v15 }
 0x151   : > { %v546_v21 = vpop.f32.mrf.mxu1 }
 0x152   : > { %595 = vst [vmem:[%s902_s18 + $0x20] sm:$0xff] %v587_v18  ;;  %v588_v22 = vadd.f32 %v580_v19, %v570_v9  ;;  %v581_v3 = vmul.f32 %v574_v41, %v563_v20  ;;  %v564_v23 = vsub.f32 %v556_v17, %v546_v21 }
 0x154   : > { %596 = vst [vmem:[%s902_s18 + $0x28] sm:$0xff] %v588_v22  ;;  %v589_v25 = vadd.f32 %v581_v3, %v571_v16  ;;  %v582_v26 = vmul.f32 %v574_v41, %v564_v23 }
 0x156   : > { %597 = vst [vmem:[%s902_s18 + $0x30] sm:$0xff] %v589_v25  ;;  %v590_v27 = vadd.f32 %v582_v26, %v572_v24 }
 0x158   : > { %598 = vst [vmem:[%s902_s18 + $0x38] sm:$0xff] %v590_v27 }
 0x159 PF: > { %s16_s22 = sadd.s32 1, %s806_s22   ;;  %s933_s20 = smov %s802_s21 }
 0x15a   : > { %p13_p5 = scmp.ge.s32.totalorder %s16_s22, 4   ;;  %s934_s21 = smov %s936_s4 }
 0x15c   :  { %15 = sbr.rel (!%p13_p5) target bundleno = 2 (0x2), region = 76 }

// kernel: attnorm_forward.2
= control target key start
LH: loop header
LB: loop body
LE: loop exit
PB: predicated region body
PF: predicated region fallthrough
CT: control target
= control target key end

     0   :  { %s1356_s30 = smov 0   ;;  %s1358_s10 = smov 0   ;;  %s1492_s0 = inlined_call_operand.vmem [shape: bf16[2,40,256], index: 0, kind: input, shape index: {}]   ;;  %s1493_s1 = inlined_call_operand.vmem [shape: bf16[2,40,16], index: 1, kind: input, shape index: {}]   ;;  %s1494_s2 = inlined_call_operand.vmem [shape: bf16[24,40], index: 2, kind: input, shape index: {}]   ;;  %s1495_s3 = inlined_call_operand.vmem [shape: bf16[32,40], index: 3, kind: input, shape index: {}]   ;;  %s1496_s4 = inlined_call_operand.vmem [shape: bf16[8,40], index: 4, kind: input, shape index: {}]   ;;  %s1497_s5 = inlined_call_operand.vmem [shape: f32[16,1], index: 5, kind: input, shape index: {}]   ;;  %s1498_s6 = inlined_call_operand.vmem [shape: f32[2,16,256], index: 6, kind: output, shape index: {0}]   ;;  %s1499_s7 = inlined_call_operand.vmem [shape: f32[2,16,32], index: 7, kind: output, shape index: {1}]   ;;  %s1500_s8 = inlined_call_operand.vmem [shape: f32[2,16,32], index: 8, kind: output, shape index: {2}]   ;;  %s1501_s9 = inlined_call_operand.vmem [shape: f32[2,16,1], index: 9, kind: output, shape index: {3}]  }
   0x1   :  { %s1360_s11 = smov 0  }
   0x2 LB: > { %s32_s12 = sadd.s32 1, %s1297_s10  ;;  %p1174_p0 = scmp.ge.s32.totalorder %s1301_s11, 1  ;;  %s1301_s11 = sphi %s1360_s11, %s20_s11   ;;  %s1297_s10 = sphi %s1358_s10, %s1503_s10   ;;  %s1293_s30 = sphi %s1356_s30, %s1502_s30  }
   0x3   : > { %p34_p1 = scmp.ge.s32.totalorder %s32_s12, 2  ;;  %p325_p2 = scmp.lt.s32.totalorder %s1301_s11, 3 }
   0x5   : > { %s1505_s12 = smov (%p34_p1, %s32_s12), 0  ;;  %p326_p3 = pnand %p1174_p0, %p325_p2 }
   0x6   : > { %p390_p4 = scmp.lt.s32.totalorder (!%p326_p3), %s1293_s30, 1 }
   0x7   : > { %329 = sbr.rel (%p326_p3) target bundleno = 789 (0x315), region = 44 }
   0xc   : > { %v1303_v0 = vmov 0   ;;  %s1507_s30 = smov (!%p390_p4, %s1293_s30), 1  ;;  %vm478_vm0 = vcmask 1043456   ;;  %v614_v12 = vld [vmem:[%s1496_s4] sm:$0xf]  ;;  %vm471_vm1 = vcmask 326656  }
   0xd   : > { %517 = vmatprep.mubr.bf16.mxu0 %v1303_v0  ;;  %588 = vmatprep.mubr.bf16.mxu1 %v1303_v0  ;;  %s1222_s13 = smul.u32 20, %s1507_s30  ;;  %v1263_v13 = vld [vmem:[%s1494_s2] sm:$0xff]   ;;  %v1304_v14 = vmov 0.0   ;;  %v651_v15 = vsel %vm471_vm1, %v614_v12, 0  ;;  %v1264_v17 = vld [vmem:[%s1494_s2 + $0x8] ss:$0 sps:$4 sm:$0xff]  }
   0xe   : > { %1250 = vset.pattern.permute.xlu1 %v1303_v0  ;;  %s1221_s14 = smul.u32 40, %s1507_s30  ;;  %v1265_v16 = vld [vmem:[%s1495_s3] sm:$0xff]   ;;  %vm1305_vm2 = vmmov 0   ;;  %v1266_v18 = vld [vmem:[%s1495_s3 + $0x8] sm:$0xff]   ;;  %vm697_vm3 = vcmask 64512   ;;  %s1427_s18 = sshll.u32 %s1507_s30, 4 }
   0xf   : > { %s403_s17 = scalar_lea.vmem %s1493_s1, %s1222_s13  ;;  %v750_v20 = vld [vmem:[%s1497_s5] sm:$0xff]  ;;  %v751_v21 = vld [vmem:[%s1497_s5 + $0x8] sm:$0xff]  ;;  %vm949_vm4 = vcmask 7168   ;;  %s1433_s21 = scalar_lea.vmem %s1501_s9, %s1427_s18  ;;  %vm944_vm5 = vcmask 261120  }
  0x10   : > { %v1252_v1 = vld [vmem:[%s403_s17] sm:$0xff]   ;;  %s397_s20 = scalar_lea.vmem %s1492_s0, %s1221_s14  ;;  %v1253_v2 = vld [vmem:[%s403_s17 + $0x8] sm:$0xff]   ;;  %v1254_v8 = vld [vmem:[%s403_s17 + $0x10] ss:$0 sps:$4 sm:$0xff]   ;;  %v752_v22 = vmax.f32 %v750_v20, 0.0  ;;  %v753_v23 = vmax.f32 %v751_v21, 0.0  ;;  %s1453_s27 = scalar_lea.vmem %s1499_s7, %s1427_s18 }
  0x11   : > { %631 = vxpose.xlu0.c.b16.start [1/3] (short) (narrow) %v1252_v1, 16  ;;  %v434_v3 = vld [vmem:[%s397_s20 + $0x20] sm:$0xff]  ;;  %v1257_v6 = vld [vmem:[%s397_s20 + $0x14] ss:$8 sps:$4 sm:$0xff]   ;;  %v1259_v9 = vld [vmem:[%s397_s20 + $0x10] ss:$8 sps:$4 sm:$0xff]   ;;  %s423_s13 = scalar_lea.vmem %s1500_s8, %s1427_s18 }
  0x12   : > { %v1192_v4 = vcombine.high %v434_v3, %v434_v3  ;;  %v1191_v5 = vcombine.low %v434_v3, %v434_v3  ;;  %v1260_v10 = vld [vmem:[%s397_s20 + $0x4] ss:$8 sps:$4 sm:$0xff]   ;;  %v1262_v11 = vld [vmem:[%s397_s20] ss:$8 sps:$4 sm:$0xff]   ;;  %v754_v24 = vmin.f32 %v752_v22, 1.0  ;;  %v755_v25 = vmin.f32 %v753_v23, 1.0 }
  0x13   : > { %951 = vst.msk [vmem:[%s1433_s21 + $0x8] sm:$0xff] %vm949_vm4, %v1304_v14  ;;  %950 = vst.msk [vmem:[%s1433_s21] sm:$0xff] %vm949_vm4, %v1304_v14  ;;  %s1209_s22 = sshll.u32 %s1507_s30, 5 }
  0x14   : > { %1193 = vmatprep.subr.msk.bf16.mxu0 %vm478_vm0, %v1192_v4  ;;  %v480_v7 = vsel %vm478_vm0, %v1191_v5, 0  ;;  %1198 = vmatprep.subr.msk.bf16.mxu1 %vm478_vm0, %v1192_v4  ;;  %s412_s25 = scalar_lea.vmem %s1498_s6, %s1209_s22  ;;  %945 = vst.msk [vmem:[%s1453_s27] sm:$0xff] %vm944_vm5, %v1304_v14  ;;  %946 = vst.msk [vmem:[%s1453_s27 + $0x8] sm:$0xff] %vm944_vm5, %v1304_v14 }
  0x15   : > { %632 = vxpose.xlu0.c.b16.cont [2/3] (short) (narrow) %v1253_v2, 16  ;;  %496 = vmatpush1.bf16.msra.mxu0 %v480_v7  ;;  %947 = vst.msk [vmem:[%s423_s13] sm:$0xff] %vm944_vm5, %v1304_v14  ;;  %948 = vst.msk [vmem:[%s423_s13 + $0x8] sm:$0xff] %vm944_vm5, %v1304_v14 }
  0x16   : > { %497 = vmatprep.subr.bf16.mxu0 %v1257_v6  ;;  %567 = vmatpush1.bf16.msra.mxu1 %v480_v7 }
  0x17   : > { %568 = vmatprep.subr.bf16.mxu1 %v1257_v6  ;;  %758 = vperm.xlu1 %1250, %v754_v24  }
  0x19   : > { %633 = vxpose.xlu0.c.b16.end [3/3] (short) (narrow) %v1254_v8, 16  ;;  %498 = vmatpush1.bf16.msra.mxu0 %v1259_v9 }
  0x1a   : > { %499 = vmatprep.subr.bf16.mxu0 %v1260_v10  ;;  %569 = vmatpush1.bf16.msra.mxu1 %v1259_v9 }
  0x1b   : > { %570 = vmatprep.subr.bf16.mxu1 %v1260_v10  ;;  %763 = vperm.xlu1 %1250, %v755_v25  }
  0x1d   : > { %500 = vmatpush1.bf16.msra.mxu0 %v1262_v11 }
  0x1e   : > { %1215 = vmatprep.subr.bf16.mxu0 %v1304_v14  ;;  %571 = vmatpush1.bf16.msra.mxu1 %v1262_v11 }
  0x20   : > { %1194 = vmatmul.mubr.msk.bf16.vlgmr.msra.gmra.mxu0 %vm471_vm1, %v1263_v13 }
  0x21   : > { %527 = vmatprep.mubr.bf16.mxu0 %v1303_v0  ;;  %1216 = vmatpush3.bf16.xpose.msra.mxu0 %v651_v15 }
  0x22   : > { %1199 = vmatmul.mubr.msk.bf16.vlgmr.msra.gmra.mxu1 %vm471_vm1, %v1265_v16  ;;  %1251 = vset.pattern.permute.xlu0 %v1303_v0 }
  0x23   : > { %598 = vmatprep.mubr.bf16.mxu1 %v1303_v0 }
  0x28   : > { %1195 = vmatmul.mubr.msk.bf16.gmra.mxu0 %vm471_vm1, %v1264_v17 }
  0x29   : > { %1217 = vmatprep.mubr.msk.bf16.mxu0 %vm1305_vm2, %v1304_v14 }
  0x2a   : > { %1200 = vmatmul.mubr.msk.bf16.gmra.mxu1 %vm471_vm1, %v1266_v18 }
  0x2b   : > { %739 = vmatprep.mubr.bf16.mxu1 %v1303_v0 }
  0x73   : > { %v639_v19 = vpop.trf.xlu0 }
  0x74   : > { %1218 = vmatmul.mubr.msk.bf16.vlgmr.msra.gmra.mxu0 %vm471_vm1, %v639_v19 }
  0x92   : > { %v759_v2 = vpop.permute.xlu1 %758 }
  0x96   : > { %v764_v7 = vpop.permute.xlu1 %763 }
  0xe0   : > { %v1416_v26 = vpop.f32.mrf.mxu0 }
  0xe2   : > { %v1418_v27 = vpop.f32.mrf.mxu0  ;;  %v590_v37 = vpop.f32.mrf.mxu1 }
  0xe3   : > { %v881_v63 = vmul.f32 %v590_v37, %v590_v37 }
  0xe4   : > { %v1420_v28 = vpop.f32.mrf.mxu0  ;;  %v592_v38 = vpop.f32.mrf.mxu1 }
  0xe5   : > { %v882_v55 = vmul.f32 %v592_v38, %v592_v38 }
  0xe6   : > { %v1422_v29 = vpop.f32.mrf.mxu0  ;;  %v594_v39 = vpop.f32.mrf.mxu1 }
  0xe7   : > { %v830_v52 = vpack.c.bf16 %v594_v39, %v590_v37  ;;  %v883_v0 = vmul.f32 %v594_v39, %v594_v39 }
  0xe8   : > { %v529_v30 = vpop.f32.mrf.mxu0  ;;  %v596_v40 = vpop.f32.mrf.mxu1 }
  0xe9   : > { %v695_v31 = vpack.c.bf16 %v529_v30, %v529_v30  ;;  %v831_v47 = vpack.c.bf16 %v596_v40, %v592_v38  ;;  %v884_v56 = vmul.f32 %v596_v40, %v596_v40  ;;  %v889_v1 = vpack.c.bf16 %v883_v0, %v881_v63 }
  0xea   : > { %v531_v32 = vpop.f32.mrf.mxu0  ;;  %v600_v41 = vpop.f32.mrf.mxu1 }
  0xeb   : > { %v702_v33 = vsel %vm478_vm0, %v695_v31, 0  ;;  %v696_v34 = vpack.c.bf16 %v531_v32, %v531_v32  ;;  %v885_v53 = vmul.f32 %v600_v41, %v600_v41  ;;  %v890_v61 = vpack.c.bf16 %v884_v56, %v882_v55 }
  0xec   : > { %v533_v35 = vpop.f32.mrf.mxu0  ;;  %v602_v42 = vpop.f32.mrf.mxu1 }
  0xed   : > { %1205 = vmatprep.subr.msk.bf16.mxu1 %vm478_vm0, %v696_v34  ;;  %v886_v44 = vmul.f32 %v602_v42, %v602_v42 }
  0xee   : > { %v534_v36 = vpop.f32.mrf.mxu0  ;;  %722 = vmatpush1.bf16.msra.mxu1 %v702_v33  ;;  %v604_v43 = vpop.f32.mrf.mxu1 }
  0xef   : > { %v832_v45 = vpack.c.bf16 %v604_v43, %v600_v41  ;;  %v887_v54 = vmul.f32 %v604_v43, %v604_v43 }
  0xf0   : > { %v606_v46 = vpop.f32.mrf.mxu1 }
  0xf1   : > { %v833_v48 = vpack.c.bf16 %v606_v46, %v602_v42  ;;  %v888_v49 = vmul.f32 %v606_v46, %v606_v46  ;;  %v891_v59 = vpack.c.bf16 %v887_v54, %v885_v53 }
  0xf3   : > { %v892_v50 = vpack.c.bf16 %v888_v49, %v886_v44  ;;  %846 = vmatprep.subr.bf16.mxu0 %v833_v48 }
  0xf4   : > { %847 = vmatpush1.bf16.xpose.msra.mxu0 %v832_v45 }
  0xf5   : > { %905 = vmatprep.subr.bf16.mxu1 %v892_v50  ;;  %848 = vmatprep.subr.bf16.mxu0 %v831_v47 }
  0xfc   : > { %849 = vmatpush1.bf16.xpose.msra.mxu0 %v830_v52 }
 0x134   : > { %v687_v51 = vpop.f32.mrf.mxu0 }
 0x136   : > { %v1219_v57 = vpop.f32.mrf.mxu0 }
 0x138   : > { %v690_v58 = vpop.f32.mrf.mxu0 }
 0x139   : > { %v694_v60 = vpack.c.bf16 %v690_v58, %v687_v51 }
 0x13a   : > { %v1220_v62 = vpop.f32.mrf.mxu0 }
 0x13b   : > { %1206 = vmatmul.mubr.msk.bf16.vlgmr.msra.gmra.mxu1 %vm697_vm3, %v694_v60 }
 0x13c   : > { %906 = vmatpush1.bf16.xpose.msra.mxu1 %v891_v59 }
 0x13d   : > { %907 = vmatprep.subr.bf16.mxu1 %v890_v61 }
 0x144   : > { %908 = vmatpush1.bf16.xpose.msra.mxu1 %v889_v1 }
 0x1fb   : > { %v741_v3 = vpop.f32.mrf.mxu1 }
 0x1fc   : > { %v766_v4 = vmul.f32 %v759_v2, %v741_v3 }
 0x1fd   : > { %v743_v5 = vpop.f32.mrf.mxu1 }
 0x1fe   : > { %v767_v6 = vmul.f32 %v759_v2, %v743_v5  ;;  %v770_v9 = vadd.f32 %v766_v4, %v1416_v26 }
 0x1ff   : > { %v745_v8 = vpop.f32.mrf.mxu1 }
 0x200   : > { %v768_v10 = vmul.f32 %v764_v7, %v745_v8  ;;  %v771_v12 = vadd.f32 %v767_v6, %v1418_v27  ;;  %v774_v16 = vmul.f32 0.1, %v770_v9 }
 0x201   : > { %v747_v11 = vpop.f32.mrf.mxu1 }
 0x202   : > { %v772_v13 = vadd.f32 %v768_v10, %v1420_v28  ;;  %v769_v15 = vmul.f32 %v764_v7, %v747_v11  ;;  %v775_v19 = vmul.f32 0.1, %v771_v12 }
 0x204   : > { %v776_v17 = vmul.f32 0.1, %v772_v13  ;;  %v773_v18 = vadd.f32 %v769_v15, %v1422_v29  ;;  %v966_v13 = vld [vmem:[%s1433_s21 + $0x8] sm:$0xff]  ;;  %v965_v15 = vld [vmem:[%s1433_s21] sm:$0xff] }
 0x206   : > { %v778_v20 = vmax.f32 %v774_v16, %v776_v17  ;;  %v777_v21 = vmul.f32 0.1, %v773_v18 }
 0x208   : > { %v779_v22 = vrot.slane %v778_v20, 4  ;;  %v785_v23 = vmax.f32 %v775_v19, %v777_v21 }
 0x20a   : > { %v780_v24 = vmax.f32 %v778_v20, %v779_v22  ;;  %v786_v25 = vrot.slane %v785_v23, 4  ;;  %v952_v20 = vld [vmem:[%s1453_s27] sm:$0xff] }
 0x20b   : > { %v959_v22 = vld [vmem:[%s423_s13] sm:$0xff] }
 0x20c   : > { %v781_v30 = vrot.slane %v780_v24, 2  ;;  %v787_v26 = vmax.f32 %v785_v23, %v786_v25 }
 0x20e   : > { %v782_v31 = vmax.f32 %v780_v24, %v781_v30  ;;  %v788_v32 = vrot.slane %v787_v26, 2  ;;  %v953_v30 = vld [vmem:[%s1453_s27 + $0x8] sm:$0xff] }
 0x210   : > { %v783_v33 = vrot.slane %v782_v31, 1  ;;  %v789_v27 = vmax.f32 %v787_v26, %v788_v32  ;;  %v960_v32 = vld [vmem:[%s423_s13 + $0x8] sm:$0xff] }
 0x212   : > { %v784_v34 = vmax.f32 %v782_v31, %v783_v33  ;;  %v790_v28 = vrot.slane %v789_v27, 1 }
 0x214   : > { %v792_v35 = vsub.f32 %v774_v16, %v784_v34  ;;  %v794_v36 = vsub.f32 %v776_v17, %v784_v34  ;;  %v791_v37 = vmax.f32 %v789_v27, %v790_v28 }
 0x216   : > { %v796_v38 = vmul.f32 1.442695, %v792_v35  ;;  %v800_v29 = vmul.f32 1.442695, %v794_v36  ;;  %v793_v39 = vsub.f32 %v775_v19, %v791_v37  ;;  %v795_v40 = vsub.f32 %v777_v21, %v791_v37 }
 0x218   : > { %1267 = vpow2.f32 %v796_v38  ;;  %v798_v41 = vmul.f32 1.442695, %v793_v39  ;;  %v802_v42 = vmul.f32 1.442695, %v795_v40 }
 0x219   : > { %1269 = vpow2.f32 %v800_v29 }
 0x21a   : > { %1271 = vpow2.f32 %v798_v41 }
 0x21b   : > { %1273 = vpow2.f32 %v802_v42 }
 0x225   : > { %v1268_v43 = vpop.eup %1267 }
 0x226   : > { %v1270_v44 = vpop.eup %1269 }
 0x227   : > { %v1272_v45 = vpop.eup %1271  ;;  %v804_v46 = vadd.f32 %v1270_v44, %v1268_v43 }
 0x228   : > { %v1274_v47 = vpop.eup %1273 }
 0x229   : > { %v805_v48 = vrot.slane %v804_v46, 4  ;;  %v811_v49 = vadd.f32 %v1274_v47, %v1272_v45 }
 0x22b   : > { %v806_v50 = vadd.f32 %v805_v48, %v804_v46  ;;  %v812_v51 = vrot.slane %v811_v49, 4 }
 0x22d   : > { %v807_v52 = vrot.slane %v806_v50, 2  ;;  %v813_v53 = vadd.f32 %v812_v51, %v811_v49 }
 0x22f   : > { %v808_v54 = vadd.f32 %v807_v52, %v806_v50  ;;  %v814_v55 = vrot.slane %v813_v53, 2 }
 0x231   : > { %v815_v56 = vadd.f32 %v814_v55, %v813_v53  ;;  %v809_v57 = vrot.slane %v808_v54, 1 }
 0x233   : > { %v810_v58 = vadd.f32 %v809_v57, %v808_v54  ;;  %v816_v59 = vrot.slane %v815_v56, 1 }
 0x235   : > { %v817_v60 = vadd.f32 %v816_v59, %v815_v56  ;;  %1275 = vrcp.f32 %v810_v58 }
 0x237   : > { %1277 = vrcp.f32 %v817_v60 }
 0x242   : > { %v1276_v61 = vpop.eup %1275 }
 0x243   : > { %v822_v62 = vmul.f32 %v1276_v61, %v1270_v44  ;;  %v819_v63 = vmul.f32 %v1276_v61, %v1268_v43 }
 0x244   : > { %v1278_v0 = vpop.eup %1277 }
 0x245   : > { %v823_v1 = vmul.f32 %v1278_v0, %v1274_v47  ;;  %826 = vst [vmem:[%s412_s25 + $0x10] sm:$0xff] %v822_v62  ;;  %v821_v2 = vmul.f32 %v1278_v0, %v1272_v45  ;;  %824 = vst [vmem:[%s412_s25] sm:$0xff] %v819_v63  ;;  %v875_v3 = vmul.f32 %v819_v63, %v819_v63 }
 0x246   : > { %v877_v4 = vmul.f32 %v822_v62, %v822_v62  ;;  %v828_v10 = vpack.c.bf16 %v822_v62, %v819_v63 }
 0x247   : > { %v937_v5 = vadd.f32 %v823_v1, %v822_v62  ;;  %827 = vst [vmem:[%s412_s25 + $0x18] sm:$0xff] %v823_v1  ;;  %v934_v6 = vadd.f32 %v821_v2, %v819_v63  ;;  %825 = vst [vmem:[%s412_s25 + $0x8] sm:$0xff] %v821_v2  ;;  %v829_v7 = vpack.c.bf16 %v823_v1, %v821_v2 }
 0x248   : > { %v876_v8 = vmul.f32 %v821_v2, %v821_v2  ;;  %v878_v9 = vmul.f32 %v823_v1, %v823_v1  ;;  %v879_v12 = vpack.c.bf16 %v877_v4, %v875_v3 }
 0x249   : > { %938 = vadd.xlane.f32.xlu0 %v937_v5  ;;  %935 = vadd.xlane.f32.xlu1 %v934_v6 }
 0x24a   : > { %866 = vmatprep.mubr.bf16.mxu0 %v829_v7  ;;  %v880_v11 = vpack.c.bf16 %v878_v9, %v876_v8 }
 0x24b   : > { %867 = vmatmul.mubr.bf16.vlgmr.msra.gmra.mxu0 %v828_v10 }
 0x24c   : > { %925 = vmatprep.mubr.bf16.mxu1 %v880_v11 }
 0x24d   : > { %926 = vmatmul.mubr.bf16.vlgmr.msra.gmra.mxu1 %v879_v12 }
 0x2d2   : > { %v939_v16 = vpop.xlane.xlu0 %938  ;;  %v936_v17 = vpop.xlane.xlu1 %935 }
 0x2d3   : > { %v968_v18 = vadd.f32 %v966_v13, %v939_v16  ;;  %v967_v19 = vadd.f32 %v965_v15, %v936_v17 }
 0x2d5   : > { %971 = vst.msk [vmem:[%s1433_s21 + $0x8] sm:$0xff] %vm949_vm4, %v968_v18  ;;  %970 = vst.msk [vmem:[%s1433_s21] sm:$0xff] %vm949_vm4, %v967_v19 }
 0x30b   : > { %v868_v21 = vpop.f32.mrf.mxu0 }
 0x30c   : > { %v954_v23 = vadd.f32 %v952_v20, %v868_v21 }
 0x30d   : > { %v870_v24 = vpop.f32.mrf.mxu0  ;;  %v927_v25 = vpop.f32.mrf.mxu1 }
 0x30e   : > { %957 = vst.msk [vmem:[%s1453_s27] sm:$0xff] %vm944_vm5, %v954_v23  ;;  %v961_v14 = vadd.f32 %v959_v22, %v927_v25 }
 0x30f   : > { %v871_v26 = vpop.f32.mrf.mxu0  ;;  %v929_v31 = vpop.f32.mrf.mxu1 }
 0x310   : > { %963 = vst.msk [vmem:[%s423_s13] sm:$0xff] %vm944_vm5, %v961_v14  ;;  %v955_v33 = vadd.f32 %v953_v30, %v871_v26 }
 0x311   : > { %v873_v27 = vpop.f32.mrf.mxu0  ;;  %v930_v34 = vpop.f32.mrf.mxu1 }
 0x312   : > { %958 = vst.msk [vmem:[%s1453_s27 + $0x8] sm:$0xff] %vm944_vm5, %v955_v33  ;;  %v962_v28 = vadd.f32 %v960_v32, %v930_v34 }
 0x313   : > { %v932_v35 = vpop.f32.mrf.mxu1 }
 0x314   : > { %964 = vst.msk [vmem:[%s423_s13 + $0x8] sm:$0xff] %vm944_vm5, %v962_v28 }
 0x315 PF: > { %s20_s11 = sadd.s32 1, %s1301_s11   ;;  %s1502_s30 = smov %s1297_s10 }
 0x316   : > { %p17_p5 = scmp.ge.s32.totalorder %s20_s11, 4   ;;  %s1503_s10 = smov %s1505_s12 }
 0x318   :  { %19 = sbr.rel (!%p17_p5) target bundleno = 2 (0x2), region = 117 }

</bundles_post_ra>
